<compile_context>
chip_gen: v7x
topology: tpu7x:2x2x1
jax: 0.10.0
libtpu: 0.0.40
codegen_flags: <defaults>
</compile_context>

<pallas_src>
import jax
import jax.numpy as jnp
from jax.experimental import pallas as pl
from jax.experimental.pallas import tpu as pltpu


def _round_up(x, m):
    return ((x + m - 1) // m) * m


def _resfeat_kernel(aug_ref, w1_ref, wlin_ref, w2_ref, wlast_t_ref, blast_ref,
                    a_ref, out_ref):
    a1 = a_ref[0, 0].astype(jnp.bfloat16)
    a2 = a_ref[0, 1]

    aug = aug_ref[...].astype(jnp.bfloat16)            # (TM, K_AUG) = [feat|onehot|1|0]

    # ---- layer1 (+ b1 folded into the augmented matmul), PReLU in bf16 ------
    h = jnp.dot(aug, w1_ref[...], preferred_element_type=jnp.float32)
    h = h.astype(jnp.bfloat16)
    h = jnp.where(h >= 0, h, a1 * h)                   # bf16 PReLU (h feeds bf16 MXU anyway)

    # ---- residual block: z = h @ Wlin + aug @ [Wres ; tab ; blin+bres] ------
    z = (jnp.dot(h, wlin_ref[...], preferred_element_type=jnp.float32)
         + jnp.dot(aug, w2_ref[...], preferred_element_type=jnp.float32))
    z = jnp.where(z >= 0.0, z, a2 * z)                 # f32 PReLU

    # ---- last layer (OUT = feat_dim, tiny): VPU mul + cross-lane reduce -----
    n_out = wlast_t_ref.shape[0]
    cols = [jnp.sum(z * wlast_t_ref[j:j + 1, :], axis=-1, keepdims=True)
            for j in range(n_out)]
    out = jnp.concatenate(cols, axis=-1) + blast_ref[...]
    out_ref[...] = out.astype(out_ref.dtype)


def res_feature_generator(feat, source_label, params, *, block_rows=2048):
    """feat: [B, feat_dim] f32, source_label: [B] int -> [B, feat_dim] f32."""
    B, F = feat.shape
    H = params["w1"].shape[1]
    C = params["emb"].shape[0]
    OUT = params["wlast"].shape[1]

    k_raw = F + C + 1
    k_aug = _round_up(k_raw, 8)
    pad = k_aug - k_raw

    hp = jax.lax.Precision.HIGHEST
    # Fold: emb[label] @ Wlab + blab == (emb @ Wlab + blab)[label]  (tiny [C, H] table).
    table = jnp.dot(params["emb"], params["wlab"], precision=hp) + params["blab"]
    bz = params["blin"] + params["bres"]

    zrow = jnp.zeros((pad, H), jnp.float32)
    # Augmented weights consumed by aug = [feat | onehot | 1 | 0...].
    w1aug = jnp.concatenate(
        [params["w1"], jnp.zeros((C, H), jnp.float32), params["b1"], zrow], axis=0
    ).astype(jnp.bfloat16)                                           # (k_aug, H)
    w2 = jnp.concatenate([params["wres"], table, bz, zrow], axis=0
                         ).astype(jnp.bfloat16)                      # (k_aug, H)
    wlin = params["wlin"].astype(jnp.bfloat16)                       # (H, H)
    wlast_t = jnp.asarray(params["wlast"].T, jnp.float32)            # (OUT, H), f32 VPU path
    blast = params["blast"]                                          # (1, OUT)
    prelu = jnp.concatenate(
        [params["a1"].reshape(1, 1), params["a2"].reshape(1, 1)], axis=1
    ).astype(jnp.float32)                                            # (1, 2) -> SMEM

    # Packed per-row streamed input: [feat | onehot(label) | 1 | zero-pad].
    labels = source_label.astype(jnp.int32)
    onehot = (labels[:, None] == jnp.arange(C, dtype=jnp.int32)[None, :]
              ).astype(jnp.float32)
    aug = jnp.concatenate(
        [feat.astype(jnp.float32), onehot,
         jnp.ones((B, 1), jnp.float32), jnp.zeros((B, pad), jnp.float32)], axis=1)

    # Tile: large to amortize per-step overhead, but >= 2 grid steps (v7x megacore).
    tm = min(block_rows, max(8, _round_up(pl.cdiv(B, 2), 8)))
    grid = (pl.cdiv(B, tm),)

    row_map = lambda i: (i, 0)
    const_map = lambda i: (0, 0)

    in_specs = [
        pl.BlockSpec((tm, k_aug), row_map),                  # packed input (streamed)
        pl.BlockSpec((k_aug, H), const_map),                 # W1aug = [W1;0;b1] (bf16, resident)
        pl.BlockSpec((H, H), const_map),                     # Wlin (bf16, resident)
        pl.BlockSpec((k_aug, H), const_map),                 # W2 = [Wres;tab;bz] (bf16, resident)
        pl.BlockSpec((OUT, H), const_map),                   # Wlast^T (f32)
        pl.BlockSpec((1, OUT), const_map),                   # blast
        pl.BlockSpec(memory_space=pltpu.MemorySpace.SMEM),   # PReLU scalars
    ]
    out_spec = pl.BlockSpec((tm, OUT), row_map)

    flops = 2 * B * (k_aug * H + H * H + k_aug * H + H * OUT)
    bytes_accessed = (4 * B * (k_aug + OUT)
                      + 2 * (2 * k_aug * H + H * H)
                      + 4 * (OUT * H + OUT) + 8)

    return pl.pallas_call(
        _resfeat_kernel,
        out_shape=jax.ShapeDtypeStruct((B, OUT), jnp.float32),
        grid=grid,
        in_specs=in_specs,
        out_specs=out_spec,
        compiler_params=pltpu.CompilerParams(
            dimension_semantics=("parallel",),
            vmem_limit_bytes=32 * 1024 * 1024,
        ),
        cost_estimate=pl.CostEstimate(
            flops=flops, transcendentals=0, bytes_accessed=bytes_accessed),
    )(aug, w1aug, wlin, w2, wlast_t, blast, prelu)


def init_params(key, feat_dim, num_classes, hidden_dim):
    """PyTorch-style init; Linear weights stored transposed as (in, out), biases (1, out).
    label_emb_dim == hidden_dim and output_dim == feat_dim (as in ResFeatureGenerator)."""
    def linear(k, fan_in, fan_out):
        kw, kb = jax.random.split(k)
        bound = 1.0 / jnp.sqrt(jnp.float32(fan_in))
        w = jax.random.uniform(kw, (fan_in, fan_out), jnp.float32, -bound, bound)
        b = jax.random.uniform(kb, (1, fan_out), jnp.float32, -bound, bound)
        return w, b

    ks = jax.random.split(key, 6)
    w1, b1 = linear(ks[0], feat_dim, hidden_dim)
    wlin, blin = linear(ks[1], hidden_dim, hidden_dim)
    wlab, blab = linear(ks[2], hidden_dim, hidden_dim)       # label_emb_dim == hidden_dim
    wres, bres = linear(ks[3], feat_dim, hidden_dim)
    wlast, blast = linear(ks[4], hidden_dim, feat_dim)       # output_dim == feat_dim
    emb = jax.random.normal(ks[5], (num_classes, hidden_dim), jnp.float32)  # nn.Embedding N(0,1)
    return dict(
        w1=w1, b1=b1, wlin=wlin, blin=blin, wlab=wlab, blab=blab,
        wres=wres, bres=bres, wlast=wlast, blast=blast, emb=emb,
        a1=jnp.array(0.25, jnp.float32),   # PReLU default init
        a2=jnp.array(0.25, jnp.float32),
    )


def reference_forward(feat, source_label, p):
    """Pure-JAX f32 reference matching the PyTorch module."""
    hp = jax.lax.Precision.HIGHEST

    def prelu(x, a):
        return jnp.where(x >= 0, x, a * x)

    lab_emb = p["emb"][source_label.astype(jnp.int32)]
    h = prelu(jnp.dot(feat, p["w1"], precision=hp) + p["b1"], p["a1"])
    z = prelu(jnp.dot(h, p["wlin"], precision=hp) + p["blin"]
              + jnp.dot(lab_emb, p["wlab"], precision=hp) + p["blab"]
              + jnp.dot(feat, p["wres"], precision=hp) + p["bres"], p["a2"])
    return jnp.dot(z, p["wlast"], precision=hp) + p["blast"]


if __name__ == "__main__":
    # Small shapes consistent with the module: feat_dim=2, num_classes=4,
    # hidden_dim=256, batch=16, num_layer=1.
    B, FEAT_DIM, NUM_CLASSES, HIDDEN = 16, 2, 4, 256

    key = jax.random.PRNGKey(0)
    k_feat, k_lab, k_params = jax.random.split(key, 3)

    feat = jax.random.normal(k_feat, (B, FEAT_DIM), jnp.float32)
    source_label = jax.random.randint(k_lab, (B,), 0, NUM_CLASSES, dtype=jnp.int32)

    params = init_params(k_params, FEAT_DIM, NUM_CLASSES, HIDDEN)

    out = res_feature_generator(feat, source_label, params)
    out = jax.block_until_ready(out)

    ref = reference_forward(feat, source_label, params)
    assert out.shape == (B, FEAT_DIM), out.shape
    # bf16 MXU operands / folded bf16 biases (f32 accumulation) vs f32 reference.
    assert jnp.allclose(out, ref, atol=3e-2, rtol=3e-2), float(jnp.max(jnp.abs(out - ref)))

    print("KERNEL_OK")
</pallas_src>

<mosaic_0001>
module attributes {stable_mosaic.version = 11 : i64} {
  func.func @_resfeat_kernel(%arg0: i32, %arg1: memref<8x8xf32, #tpu.memory_space<vmem>>, %arg2: memref<8x256xbf16, #tpu.memory_space<vmem>>, %arg3: memref<256x256xbf16, #tpu.memory_space<vmem>>, %arg4: memref<8x256xbf16, #tpu.memory_space<vmem>>, %arg5: memref<2x256xf32, #tpu.memory_space<vmem>>, %arg6: memref<1x2xf32, #tpu.memory_space<vmem>>, %arg7: memref<1x2xf32, #tpu.memory_space<smem>>, %arg8: memref<8x2xf32, #tpu.memory_space<vmem>>) attributes {dimension_semantics = [#tpu.dimension_semantics<parallel>], iteration_bounds = array<i64: 2>, scalar_prefetch = 0 : i64, scratch_operands = 0 : i64, tpu.core_type = #tpu.core_type<tc>, window_params = [{transform_indices = @transform_0, window_bounds = array<i64: 8, 8>}, {pipeline_mode = #tpu.pipeline_mode<synchronous>, transform_indices = @transform_1, window_bounds = array<i64: 8, 256>}, {pipeline_mode = #tpu.pipeline_mode<synchronous>, transform_indices = @transform_2, window_bounds = array<i64: 256, 256>}, {pipeline_mode = #tpu.pipeline_mode<synchronous>, transform_indices = @transform_3, window_bounds = array<i64: 8, 256>}, {pipeline_mode = #tpu.pipeline_mode<synchronous>, transform_indices = @transform_4, window_bounds = array<i64: 2, 256>}, {pipeline_mode = #tpu.pipeline_mode<synchronous>, transform_indices = @transform_5, window_bounds = array<i64: 1, 2>}, {transform_indices = @transform_6, window_bounds = array<i64: 1, 2>}, {transform_indices = @transform_7, window_bounds = array<i64: 8, 2>}]} {
    %c0 = arith.constant 0 : index
    %c0_0 = arith.constant 0 : index
    %0 = memref.load %arg7[%c0, %c0_0] : memref<1x2xf32, #tpu.memory_space<smem>>
    %1 = arith.truncf %0 : f32 to bf16
    %c0_1 = arith.constant 0 : index
    %c1 = arith.constant 1 : index
    %2 = memref.load %arg7[%c0_1, %c1] : memref<1x2xf32, #tpu.memory_space<smem>>
    %c0_2 = arith.constant 0 : index
    %c0_3 = arith.constant 0 : index
    %3 = vector.load %arg1[%c0_2, %c0_3] : memref<8x8xf32, #tpu.memory_space<vmem>>, vector<8x8xf32>
    %4 = arith.truncf %3 : vector<8x8xf32> to vector<8x8xbf16>
    %c0_4 = arith.constant 0 : index
    %c0_5 = arith.constant 0 : index
    %5 = vector.load %arg2[%c0_4, %c0_5] : memref<8x256xbf16, #tpu.memory_space<vmem>>, vector<8x256xbf16>
    %cst = arith.constant dense<0.000000e+00> : vector<8x256xf32>
    %6 = tpu.matmul %4, %5, %cst {dimension_numbers = #tpu.dot_dimension_numbers<[1], [0], [0], [1], [0, 0, 1, 1], [], []>} : vector<8x8xbf16>, vector<8x256xbf16>, vector<8x256xf32> -> vector<8x256xf32>
    %7 = arith.truncf %6 : vector<8x256xf32> to vector<8x256xbf16>
    %cst_6 = arith.constant 0.000000e+00 : bf16
    %8 = vector.broadcast %cst_6 : bf16 to vector<8x256xbf16>
    %9 = arith.cmpf oge, %7, %8 : vector<8x256xbf16>
    %10 = vector.broadcast %1 : bf16 to vector<8x256xbf16>
    %11 = arith.mulf %10, %7 : vector<8x256xbf16>
    %12 = arith.select %9, %7, %11 : vector<8x256xi1>, vector<8x256xbf16>
    %c0_7 = arith.constant 0 : index
    %c0_8 = arith.constant 0 : index
    %13 = vector.load %arg3[%c0_7, %c0_8] : memref<256x256xbf16, #tpu.memory_space<vmem>>, vector<256x256xbf16>
    %cst_9 = arith.constant dense<0.000000e+00> : vector<8x256xf32>
    %14 = tpu.matmul %12, %13, %cst_9 {dimension_numbers = #tpu.dot_dimension_numbers<[1], [0], [0], [1], [0, 0, 1, 1], [], []>} : vector<8x256xbf16>, vector<256x256xbf16>, vector<8x256xf32> -> vector<8x256xf32>
    %c0_10 = arith.constant 0 : index
    %c0_11 = arith.constant 0 : index
    %15 = vector.load %arg4[%c0_10, %c0_11] : memref<8x256xbf16, #tpu.memory_space<vmem>>, vector<8x256xbf16>
    %cst_12 = arith.constant dense<0.000000e+00> : vector<8x256xf32>
    %16 = tpu.matmul %4, %15, %cst_12 {dimension_numbers = #tpu.dot_dimension_numbers<[1], [0], [0], [1], [0, 0, 1, 1], [], []>} : vector<8x8xbf16>, vector<8x256xbf16>, vector<8x256xf32> -> vector<8x256xf32>
    %17 = arith.addf %14, %16 : vector<8x256xf32>
    %cst_13 = arith.constant 0.000000e+00 : f32
    %18 = vector.broadcast %cst_13 : f32 to vector<8x256xf32>
    %19 = arith.cmpf oge, %17, %18 : vector<8x256xf32>
    %20 = vector.broadcast %2 : f32 to vector<8x256xf32>
    %21 = arith.mulf %20, %17 : vector<8x256xf32>
    %22 = arith.select %19, %17, %21 : vector<8x256xi1>, vector<8x256xf32>
    %c0_14 = arith.constant 0 : index
    %c0_15 = arith.constant 0 : index
    %23 = vector.load %arg5[%c0_14, %c0_15] : memref<2x256xf32, #tpu.memory_space<vmem>>, vector<1x256xf32>
    %24 = vector.broadcast %23 : vector<1x256xf32> to vector<8x256xf32>
    %25 = arith.mulf %22, %24 : vector<8x256xf32>
    %cst_16 = arith.constant dense<0.000000e+00> : vector<8xf32>
    %26 = vector.multi_reduction <add>, %25, %cst_16 [1] : vector<8x256xf32> to vector<8xf32>
    %27 = vector.shape_cast %26 : vector<8xf32> to vector<8x1xf32>
    %c1_17 = arith.constant 1 : index
    %c0_18 = arith.constant 0 : index
    %28 = vector.load %arg5[%c1_17, %c0_18] : memref<2x256xf32, #tpu.memory_space<vmem>>, vector<1x256xf32>
    %29 = vector.broadcast %28 : vector<1x256xf32> to vector<8x256xf32>
    %30 = arith.mulf %22, %29 : vector<8x256xf32>
    %cst_19 = arith.constant dense<0.000000e+00> : vector<8xf32>
    %31 = vector.multi_reduction <add>, %30, %cst_19 [1] : vector<8x256xf32> to vector<8xf32>
    %32 = vector.shape_cast %31 : vector<8xf32> to vector<8x1xf32>
    %33 = tpu.concatenate %27, %32 in 1 : vector<8x1xf32>, vector<8x1xf32> -> vector<8x2xf32>
    %c0_20 = arith.constant 0 : index
    %c0_21 = arith.constant 0 : index
    %34 = vector.load %arg6[%c0_20, %c0_21] : memref<1x2xf32, #tpu.memory_space<vmem>>, vector<1x2xf32>
    %35 = vector.broadcast %34 : vector<1x2xf32> to vector<8x2xf32>
    %36 = arith.addf %33, %35 : vector<8x2xf32>
    %c0_22 = arith.constant 0 : index
    %c0_23 = arith.constant 0 : index
    %37 = vector.load %arg8[%c0_22, %c0_23] : memref<8x2xf32, #tpu.memory_space<vmem>>, vector<8x2xf32>
    tpu.vector_store %arg8[%c0_22, %c0_23], %36 {strides = array<i32>} : memref<8x2xf32, #tpu.memory_space<vmem>>, vector<8x2xf32>,
    return
  }
  func.func @transform_0(%arg0: i32) -> (i32, i32) {
    %c0_i32 = arith.constant 0 : i32
    %c0_i32_0 = arith.constant 0 : i32
    return %arg0, %c0_i32 : i32, i32
  }
  func.func @transform_1(%arg0: i32) -> (i32, i32) {
    %c0_i32 = arith.constant 0 : i32
    %c0_i32_0 = arith.constant 0 : i32
    %c0_i32_1 = arith.constant 0 : i32
    return %c0_i32, %c0_i32_0 : i32, i32
  }
  func.func @transform_2(%arg0: i32) -> (i32, i32) {
    %c0_i32 = arith.constant 0 : i32
    %c0_i32_0 = arith.constant 0 : i32
    %c0_i32_1 = arith.constant 0 : i32
    return %c0_i32, %c0_i32_0 : i32, i32
  }
  func.func @transform_3(%arg0: i32) -> (i32, i32) {
    %c0_i32 = arith.constant 0 : i32
    %c0_i32_0 = arith.constant 0 : i32
    %c0_i32_1 = arith.constant 0 : i32
    return %c0_i32, %c0_i32_0 : i32, i32
  }
  func.func @transform_4(%arg0: i32) -> (i32, i32) {
    %c0_i32 = arith.constant 0 : i32
    %c0_i32_0 = arith.constant 0 : i32
    %c0_i32_1 = arith.constant 0 : i32
    return %c0_i32, %c0_i32_0 : i32, i32
  }
  func.func @transform_5(%arg0: i32) -> (i32, i32) {
    %c0_i32 = arith.constant 0 : i32
    %c0_i32_0 = arith.constant 0 : i32
    %c0_i32_1 = arith.constant 0 : i32
    return %c0_i32, %c0_i32_0 : i32, i32
  }
  func.func @transform_6(%arg0: i32) -> (i32, i32) {
    %c0_i32 = arith.constant 0 : i32
    %c0_i32_0 = arith.constant 0 : i32
    %c0_i32_1 = arith.constant 0 : i32
    return %c0_i32, %c0_i32_0 : i32, i32
  }
  func.func @transform_7(%arg0: i32) -> (i32, i32) {
    %c0_i32 = arith.constant 0 : i32
    %c0_i32_0 = arith.constant 0 : i32
    return %arg0, %c0_i32 : i32, i32
  }
}

</mosaic_0001>

<bundles_post_ra>
// kernel: tpu_custom_call.1
= control target key start
LH: loop header
LB: loop body
LE: loop exit
PB: predicated region body
PF: predicated region fallthrough
CT: control target
= control target key end

     0   :  { %12 = vsyncpa [#allocation3], 0  ;;  %s1164_s0 = inlined_call_operand.vmem [shape: f32[16,8], index: 0, kind: input, shape index: {}]   ;;  %s1165_s1 = inlined_call_operand.vmem [shape: bf16[8,256], index: 1, kind: input, shape index: {}]   ;;  %s1166_s2 = inlined_call_operand.hbm [shape: bf16[256,256], index: 2, kind: input, shape index: {}]   ;;  %s1167_s3 = inlined_call_operand.vmem [shape: bf16[8,256], index: 3, kind: input, shape index: {}]   ;;  %s1168_s4 = inlined_call_operand.vmem [shape: f32[2,256], index: 4, kind: input, shape index: {}]   ;;  %s1169_s5 = inlined_call_operand.vmem [shape: f32[1,2], index: 5, kind: input, shape index: {}]   ;;  %s1170_s6 = inlined_call_operand.vmem [shape: f32[1,2], index: 6, kind: input, shape index: {}]   ;;  %s1171_s7 = inlined_call_operand.vmem [shape: f32[16,2], index: 7, kind: output, shape index: {}]  }
   0x1   :  { %13 = vsyncpa [#allocation4], 0  ;;  %s1051_s24 = smov 0  }
   0x2 LB: > { %s1057_s25 = sadd.s32 4294967295, %s1004_s24   ;;  %p807_p0 = scmp.ge.s32.totalorder %s1004_s24, 1  ;;  %s1004_s24 = sphi %s1051_s24, %s19_s24  }
   0x3   : > { %p202_p1 = scmp.lt.s32.totalorder %s1004_s24, 3  ;;  %s1006_s26 = smov [#allocation2]  }
   0x4   : > { %s217_s27 = sshll.u32 %s1006_s26, 4  ;;  %p1172_p3 = scmp.eq.s32.totalorder %s1057_s25, 0  ;;  %s218_s27 = int_to_ptr.vmem [resolvable:$true] %s217_s27 }
   0x5   : > { %p1061_p2 = pnand %p807_p0, %p202_p1  ;;  %s240_s8 = sshll.u32 %s1170_s6, 4  ;;  %s1077_s8 = int_to_ptr.vmem [resolvable:$true] %s240_s8 }
   0x6   : > { %s947_s12 = scalar_lea.hbm %s1166_s2, 4096 }
   0x7   : > { %s1174_s28 = scalar_select %p1061_p2, 1, 0 }
   0x8   : > { %p871_p4 = pneg %p1061_p2  ;;  %p948_p6 = scmp.ne.s32.totalorder %s1166_s2, %s947_s12 }
   0x9   : > { %p954_p10 = scmp.lt.u32.totalorder %s947_s12, %s1166_s2 }
   0xa   : > { %p1073_p5 = pnand %p1172_p3, %p871_p4 }
   0xc   : > { %p949_p7 = pneg %p1073_p5 }
   0xe   : > { %p950_p8 = pnand %p949_p7, %p948_p6 }
  0x10   : > { %p951_p9 = pneg %p950_p8 }
  0x12   : > { %p956_p11 = pnand %p954_p10, %p951_p9 }
  0x14   : > { %959 = shalt.err (!%p956_p11)
}
  0x15   : > { %s960_s17 = scalar_lea.vmem %s218_s27, 4096  ;;  %p968_p1 = scmp.lt.s32.totalorder %s218_s27, %s218_s27 }
  0x16   : > { %p961_p12 = scmp.ne.s32.totalorder %s218_s27, %s960_s17  ;;  %p969_p4 = scmp.lt.s32.totalorder %s960_s17, %s960_s17 }
  0x18   : > { %p963_p13 = pnand %p961_p12, %p949_p7  ;;  %p970_p3 = por %p969_p4, %p968_p1 }
  0x1a   : > { %p964_p0 = pneg %p963_p13 }
  0x1c   : > { %p971_p2 = pnand %p970_p3, %p964_p0 }
  0x1e   : > { %974 = shalt.err (!%p971_p2)
}
  0x1f   : > { %s1007_s18 = smov 128   ;;  %s1008_s19 = smov 8  }
  0x20   : > { %874 = dma.hbm_to_vmem [thread:$0]  (!%p1073_p5), %s1166_s2, 4096, %s218_s27, [#allocation3], %s1007_s18, %s1007_s18, %s1008_s19  }
  0x21   : > { %s975_s22 = scalar_lea.vmem %s1077_s8, 16  ;;  %p983_p2 = scmp.lt.s32.totalorder %s1077_s8, %s1077_s8 }
  0x22   : > { %p976_p6 = scmp.ne.s32.totalorder %s1077_s8, %s975_s22  ;;  %p984_p3 = scmp.lt.s32.totalorder %s975_s22, %s975_s22 }
  0x24   : > { %p978_p8 = pnand %p976_p6, %p949_p7  ;;  %p985_p10 = por %p984_p3, %p983_p2 }
  0x26   : > { %p979_p9 = pneg %p978_p8 }
  0x28   : > { %p986_p11 = pnand %p985_p10, %p979_p9 }
  0x2a   : > { %989 = shalt.err (!%p986_p11)
}
  0x2b   : > { %s1009_s23 = smov [#allocation5]   ;;  %p1176_p12 = scmp.ne.s32.totalorder %s1174_s28, 0 }
  0x2c   : > { %877 = dma.vmem_to_smem (!%p1073_p5), %s1077_s8, 16, %s1009_s23, [#allocation4]  }
  0x2d   : > { %260 = sbr.rel (%p1176_p12) target bundleno = 659 (0x293), region = 48  ;;  %p1177_p13 = scmp.eq.s32.totalorder (!%p1176_p12), %s1057_s25, 0 }
  0x34   : > { %995 = dma.done.wait (%p1177_p13), [#allocation3], 4096   ;;  %p1178_p7 = pmov %p1177_p13 }
  0x36   : > { %997 = vsyncadd (%p1178_p7), [#allocation3], 4294963200  ;;  %p1179_p0 = pmov %p1178_p7 }
  0x38   : > { %999 = dma.done.wait (%p1179_p0), [#allocation4], 16   ;;  %p1180_p1 = pmov %p1179_p0 }
  0x3a   : > { %1001 = vsyncadd (%p1180_p1), [#allocation4], 4294967280 }
  0x3b   : > { %270 = sfence }
  0x3c   : > { %v318_v0 = vld [vmem:[%s1165_s1] sm:$0xff]  ;;  %vm328_vm0 = vcmask 1043456   ;;  %p295_p5 = scmp.lt.s32.totalorder %s1057_s25, 1  ;;  %v1010_v3 = vmov 0   ;;  %v900_v6 = vld [vmem:[#allocation2 + $0x14] ss:$8 sps:$4 sm:$0xff]   ;;  %v683_v58 = vlaneseq }
  0x3d   : > { %v818_v1 = vcombine.high %v318_v0, %v318_v0  ;;  %v817_v2 = vcombine.low %v318_v0, %v318_v0  ;;  %367 = vmatprep.mubr.bf16.mxu0 %v1010_v3  ;;  %v897_v4 = vld [vmem:[#allocation2 + $0x4] ss:$8 sps:$4 sm:$0xff]   ;;  %v899_v5 = vld [vmem:[#allocation2] ss:$8 sps:$4 sm:$0xff]   ;;  %v902_v8 = vld [vmem:[#allocation2 + $0x10] ss:$8 sps:$4 sm:$0xff]  }
  0x3e   : > { %s1182_s25 = smov (!%p295_p5, %s1057_s25), 1  ;;  %633 = vmatprep.subr.bf16.mxu1 %v897_v4  ;;  %v903_v9 = vld [vmem:[#allocation2 + $0x24] ss:$8 sps:$4 sm:$0xff]   ;;  %vm324_vm1 = vcmask 64512   ;;  %v905_v12 = vld [vmem:[#allocation2 + $0x20] ss:$8 sps:$4 sm:$0xff]  }
  0x3f   : > { %819 = vmatprep.subr.msk.bf16.mxu0 %vm328_vm0, %v818_v1  ;;  %v330_v7 = vsel %vm328_vm0, %v817_v2, 0  ;;  %s814_s28 = sshll.u32 %s1182_s25, 3  ;;  %634 = vmatpush1.bf16.msra.mxu1 %v899_v5  ;;  %v906_v13 = vld [vmem:[#allocation2 + $0x34] ss:$8 sps:$4 sm:$0xff]   ;;  %v908_v14 = vld [vmem:[#allocation2 + $0x30] ss:$8 sps:$4 sm:$0xff]  }
  0x40   : > { %336 = vmatpush1.bf16.msra.mxu0 %v330_v7  ;;  %s298_s8 = scalar_lea.vmem %s1164_s0, %s814_s28  ;;  %635 = vmatprep.subr.bf16.mxu1 %v900_v6  ;;  %v909_v15 = vld [vmem:[#allocation2 + $0x44] ss:$8 sps:$4 sm:$0xff]   ;;  %v911_v16 = vld [vmem:[#allocation2 + $0x40] ss:$8 sps:$4 sm:$0xff]   ;;  %v912_v17 = vld [vmem:[#allocation2 + $0x54] ss:$8 sps:$4 sm:$0xff]   ;;  %s302_s9 = scalar_lea.vmem %s1171_s7, %s814_s28 }
  0x41   : > { %v316_v10 = vld [vmem:[%s298_s8] sm:$0xff]  ;;  %v914_v18 = vld [vmem:[#allocation2 + $0x50] ss:$8 sps:$4 sm:$0xff]   ;;  %v918_v23 = vld [vmem:[#allocation2 + $0x74] ss:$8 sps:$4 sm:$0xff]   ;;  %s304_s11 = sld [smem:[#allocation5]] }
  0x42   : > { %v1136_v11 = vpack.c.bf16 %v316_v10, %v316_v10  ;;  %v420_v19 = vld [vmem:[%s1167_s3] sm:$0xff]  ;;  %v920_v24 = vld [vmem:[#allocation2 + $0x70] ss:$8 sps:$4 sm:$0xff]   ;;  %v924_v27 = vld [vmem:[#allocation2 + $0x94] ss:$8 sps:$4 sm:$0xff]   ;;  %s816_s20 = sld [smem:[#allocation5 + $0x1]] }
  0x43   : > { %636 = vmatpush1.bf16.msra.mxu1 %v902_v8  ;;  %v822_v20 = vcombine.high %v420_v19, %v420_v19  ;;  %v915_v21 = vld [vmem:[#allocation2 + $0x64] ss:$8 sps:$4 sm:$0xff]   ;;  %v917_v22 = vld [vmem:[#allocation2 + $0x60] ss:$8 sps:$4 sm:$0xff]   ;;  %v926_v28 = vld [vmem:[#allocation2 + $0x90] ss:$8 sps:$4 sm:$0xff]   ;;  %v821_v38 = vcombine.low %v420_v19, %v420_v19 }
  0x44   : > { %820 = vmatmul.mubr.msk.bf16.vlgmr.msra.gmra.mrb[0].mxu0 %vm324_vm1, %v1136_v11  ;;  %637 = vmatprep.subr.bf16.mxu1 %v903_v9  ;;  %v921_v25 = vld [vmem:[#allocation2 + $0x84] ss:$8 sps:$4 sm:$0xff]   ;;  %v923_v26 = vld [vmem:[#allocation2 + $0x80] ss:$8 sps:$4 sm:$0xff]   ;;  %v930_v31 = vld [vmem:[#allocation2 + $0xb4] ss:$8 sps:$4 sm:$0xff]  }
  0x45   : > { %464 = vmatprep.mubr.bf16.mxu0 %v1010_v3  ;;  %823 = vmatprep.subr.msk.bf16.mxu0 %vm328_vm0, %v822_v20  ;;  %v927_v29 = vld [vmem:[#allocation2 + $0xa4] ss:$8 sps:$4 sm:$0xff]   ;;  %v929_v30 = vld [vmem:[#allocation2 + $0xa0] ss:$8 sps:$4 sm:$0xff]   ;;  %v932_v32 = vld [vmem:[#allocation2 + $0xb0] ss:$8 sps:$4 sm:$0xff]  }
  0x46   : > { %v933_v33 = vld [vmem:[#allocation2 + $0xc4] ss:$8 sps:$4 sm:$0xff]   ;;  %v935_v34 = vld [vmem:[#allocation2 + $0xc0] ss:$8 sps:$4 sm:$0xff]   ;;  %v936_v35 = vld [vmem:[#allocation2 + $0xd4] ss:$8 sps:$4 sm:$0xff]  }
  0x47   : > { %638 = vmatpush1.bf16.msra.mxu1 %v905_v12  ;;  %v938_v36 = vld [vmem:[#allocation2 + $0xd0] ss:$8 sps:$4 sm:$0xff]   ;;  %v941_v37 = vld [vmem:[#allocation2 + $0xe4] ss:$8 sps:$4 sm:$0xff]   ;;  %v943_v39 = vld [vmem:[#allocation2 + $0xe0] ss:$8 sps:$4 sm:$0xff]   ;;  %p306_p4 = scmp.ne.f32.partialorder %s304_s11, %s304_s11 }
  0x48   : > { %639 = vmatprep.subr.bf16.mxu1 %v906_v13  ;;  %v427_v40 = vsel %vm328_vm0, %v821_v38, 0  ;;  %v944_v41 = vld [vmem:[#allocation2 + $0xf4] ss:$8 sps:$4 sm:$0xff]   ;;  %v946_v42 = vld [vmem:[#allocation2 + $0xf0] ss:$8 sps:$4 sm:$0xff]   ;;  %s307_s12 = sshrl.u32 %s304_s11, 16  ;;  %v676_v1 = vstv %s816_s20 }
  0x49   : > { %433 = vmatpush1.bf16.msra.mxu0 %v427_v40  ;;  %s308_s13 = sand.u32 1, %s307_s12  ;;  %v684_v59 = vshrl.u32 %v683_v58, 7  ;;  %v681_v60 = vld [vmem:[%s1168_s4] ss:$2 sm:$0x3]  ;;  %vm716_vm6 = vcmask 7168  }
  0x4a   : > { %s309_s14 = sadd.s32 32767, %s308_s13  ;;  %v857_v63 = vld [vmem:[%s1168_s4 + $0x1] ss:$2 sm:$0x3]  ;;  %vm726_vm7 = vcmask 15360  }
  0x4b   : > { %640 = vmatpush1.bf16.msra.mxu1 %v908_v14  ;;  %s310_s15 = sadd.s32 %s309_s14, %s304_s11  ;;  %v685_v61 = vsub.s32 0, %v684_v59  ;;  %v689_v62 = vsub.s32 1, %v684_v59 }
  0x4c   : > { %641 = vmatprep.subr.bf16.mxu1 %v909_v15  ;;  %824 = vmatmul.mubr.msk.bf16.vlgmr.msra.gmra.mrb[4].mxu0 %vm324_vm1, %v1136_v11  ;;  %s311_s16 = sand.u32 4294901760, %s310_s15 }
  0x4d   : > { %s1184_s16 = smov (%p306_p4, %s311_s16), 2143289344  ;;  %v686_v6 = vrot.slane %v681_v60, %v685_v61  ;;  %v704_v7 = vrot.slane %v857_v63, %v685_v61  ;;  %v690_v10 = vrot.slane %v681_v60, %v689_v62  ;;  %v708_v11 = vrot.slane %v857_v63, %v689_v62 }
  0x4e   : > { %s314_s17 = sshrl.u32 %s1184_s16, 16 }
  0x4f   : > { %642 = vmatpush1.bf16.msra.mxu1 %v911_v16  ;;  %s380_s18 = sshll.u32 %s314_s17, 16 }
  0x50   : > { %643 = vmatprep.subr.bf16.mxu1 %v912_v17  ;;  %s381_s19 = sor.u32 %s380_s18, %s314_s17 }
  0x51   : > { %v382_v44 = vstv %s381_s19 }
  0x53   : > { %644 = vmatpush1.bf16.msra.mxu1 %v914_v18 }
  0x54   : > { %645 = vmatprep.subr.bf16.mxu1 %v915_v21 }
  0x57   : > { %646 = vmatpush1.bf16.msra.mxu1 %v917_v22  ;;  %v858_v22 = vld [vmem:[%s1169_s5] ss:$0 sm:$0xff] }
  0x58   : > { %647 = vmatprep.subr.bf16.mxu1 %v918_v23 }
  0x5b   : > { %648 = vmatpush1.bf16.msra.mxu1 %v920_v24 }
  0x5c   : > { %649 = vmatprep.subr.bf16.mxu1 %v921_v25 }
  0x5f   : > { %650 = vmatpush1.bf16.msra.mxu1 %v923_v26 }
  0x60   : > { %651 = vmatprep.subr.bf16.mxu1 %v924_v27 }
  0x63   : > { %652 = vmatpush1.bf16.msra.mxu1 %v926_v28 }
  0x64   : > { %653 = vmatprep.subr.bf16.mxu1 %v927_v29 }
  0x67   : > { %654 = vmatpush1.bf16.msra.mxu1 %v929_v30 }
  0x68   : > { %655 = vmatprep.subr.bf16.mxu1 %v930_v31 }
  0x6b   : > { %656 = vmatpush1.bf16.msra.mxu1 %v932_v32 }
  0x6c   : > { %657 = vmatprep.subr.bf16.mxu1 %v933_v33 }
  0x6f   : > { %658 = vmatpush1.bf16.msra.mxu1 %v935_v34 }
  0x70   : > { %659 = vmatprep.subr.bf16.mxu1 %v936_v35 }
  0x73   : > { %660 = vmatpush1.bf16.msra.mxu1 %v938_v36 }
  0x74   : > { %661 = vmatprep.subr.bf16.mxu1 %v941_v37 }
  0x77   : > { %662 = vmatpush1.bf16.msra.mxu1 %v943_v39 }
  0x78   : > { %663 = vmatprep.subr.bf16.mxu1 %v944_v41 }
  0x7b   : > { %664 = vmatpush1.bf16.msra.mxu1 %v946_v42 }
 0x117   : > { %v369_v43 = vpop.f32.mrb[0].mxu0 }
 0x118   : > { %v376_v45 = vpack.c.bf16 %v369_v43, %v369_v43  ;;  %v371_v46 = vpop.f32.mrb[1].mxu0 }
 0x119   : > { %v377_v47 = vpack.c.bf16 %v371_v46, %v371_v46  ;;  %v373_v48 = vpop.f32.mrb[2].mxu0 }
 0x11a   : > { %v384_v49 = vmul.bf16 %v382_v44, %v376_v45  ;;  %v374_v50 = vpop.f32.mrb[3].mxu0  ;;  %vm378_vm3 = vcmp.ge.bf16.partialorder %v376_v45, 0 }
 0x11b   : > { %vm379_vm2 = vcmp.ge.bf16.partialorder %v377_v47, 0  ;;  %v385_v51 = vmul.bf16 %v382_v44, %v377_v47 }
 0x11c   : > { %v386_v53 = vsel %vm378_vm3, %v376_v45, %v384_v49 }
 0x11d   : > { %v387_v52 = vsel %vm379_vm2, %v377_v47, %v385_v51 }
 0x11e   : > { %665 = vmatprep.mubr.bf16.mxu1 %v387_v52 }
 0x11f   : > { %666 = vmatmul.mubr.bf16.vlgmr.msra.gmra.mrb[0].mxu1 %v386_v53  ;;  %v466_v54 = vpop.f32.mrb[4].mxu0 }
 0x120   : > { %v468_v55 = vpop.f32.mrb[5].mxu0 }
 0x121   : > { %v470_v56 = vpop.f32.mrb[6].mxu0 }
 0x122   : > { %v471_v57 = vpop.f32.mrb[7].mxu0 }
 0x1f2   : > { %v667_v0 = vpop.f32.mrb[0].mxu1 }
 0x1f3   : > { %v668_v2 = vadd.f32 %v667_v0, %v466_v54  ;;  %v669_v3 = vpop.f32.mrb[1].mxu1 }
 0x1f4   : > { %v670_v4 = vadd.f32 %v669_v3, %v468_v55  ;;  %v671_v5 = vpop.f32.mrb[2].mxu1 }
 0x1f5   : > { %vm674_vm4 = vcmp.ge.f32.partialorder %v668_v2, 0.0  ;;  %v677_v8 = vmul.f32 %v676_v1, %v668_v2  ;;  %v672_v9 = vpop.f32.mrb[3].mxu1 }
 0x1f6   : > { %vm675_vm5 = vcmp.ge.f32.partialorder %v670_v4, 0.0  ;;  %v678_v12 = vmul.f32 %v676_v1, %v670_v4 }
 0x1f7   : > { %v679_v13 = vsel %vm674_vm4, %v668_v2, %v677_v8 }
 0x1f8   : > { %v680_v14 = vsel %vm675_vm5, %v670_v4, %v678_v12  ;;  %v693_v15 = vmul.f32 %v686_v6, %v679_v13  ;;  %v711_v16 = vmul.f32 %v704_v7, %v679_v13 }
 0x1f9   : > { %v694_v17 = vmul.f32 %v690_v10, %v680_v14  ;;  %v712_v18 = vmul.f32 %v708_v11, %v680_v14 }
 0x1fb   : > { %v695_v19 = vadd.f32 %v694_v17, %v693_v15  ;;  %v713_v20 = vadd.f32 %v712_v18, %v711_v16 }
 0x1fd   : > { %696 = vadd.xlane.f32.xlu0 %v695_v19 }
 0x201   : > { %714 = vadd.xlane.f32.xlu0 %v713_v20 }
 0x28a   : > { %v697_v21 = vpop.xlane.xlu0 %696 }
 0x28e   : > { %v715_v23 = vpop.xlane.xlu0 %714 }
 0x28f   : > { %v717_v24 = vsel %vm716_vm6, %v697_v21, %v715_v23 }
 0x290   : > { %v725_v25 = vadd.f32 %v858_v22, %v717_v24 }
 0x292   : > { %727 = vst.msk [vmem:[%s302_s9] sm:$0xff] %vm726_vm7, %v725_v25 }
 0x293 PF: > { %s19_s24 = sadd.s32 1, %s1004_s24  }
 0x294   : > { %p16_p6 = scmp.ge.s32.totalorder %s19_s24, 4  }
 0x296   :  { %18 = sbr.rel (!%p16_p6) target bundleno = 2 (0x2), region = 89 }
 0x29d   :  { %747 = vsyncpa [#allocation3], 1 }
 0x29e   :  { %749 = vsyncpa [#allocation3 + $0x1], 1 }
 0x29f   :  { %750 = vsyncpa [#allocation4], 1 }
 0x2a0   :  { %752 = vsyncpa [#allocation4 + $0x1], 1 }

</bundles_post_ra>
